<compile_context>
chip_gen: v6e
topology: v6e:2x2x1
jax: 0.10.0
libtpu: 0.0.40
codegen_flags: <defaults>
</compile_context>

<pallas_src>
import jax
import jax.numpy as jnp
from jax.experimental import pallas as pl
from jax.experimental.pallas import tpu as pltpu


_LANE = 128
_SUBLANE = 8
_MAX_LANE_WIDTH = 2048            # lane-dense output: up to 16 vregs wide
_TARGET_BLOCK_BYTES = 2 << 20     # ~2 MiB/block -> <= 8 MiB pipelined (2x in + 2x out)


def _identity_kernel(x_ref, o_ref):
    # Straight VMEM tile copy (identity forward pass).
    o_ref[...] = x_ref[...]


def _choose_layout(shape, itemsize):
    """Pick a TPU-friendly 2-D view (rows, lane) and a row-tile size tr."""
    n = 1
    for d in shape:
        n *= d

    if n % _LANE == 0:
        # Lane-dense path: last dim is the largest multiple of 128 (<= 2048)
        # dividing the element count -> unmasked, full-width vector stores.
        lane = _LANE
        for mult in range(_MAX_LANE_WIDTH // _LANE, 0, -1):
            cand = _LANE * mult
            if n % cand == 0:
                lane = cand
                break
        rows = n // lane
    else:
        # Fallback for sizes not divisible by 128: keep the trailing dim on
        # the lane axis (full-extent blocks are always layout-legal). This is
        # only hit for small/odd shapes; identity is layout-agnostic anyway.
        if len(shape) >= 2:
            lane = shape[-1]
            rows = n // lane
        else:
            lane, rows = max(n, 1), 1

    # Byte-targeted row tile: ~_TARGET_BLOCK_BYTES per block, rounded to a
    # multiple of the 8-row sublane granule (or the full row extent).
    rows_target = max(1, _TARGET_BLOCK_BYTES // max(1, lane * itemsize))
    if rows <= rows_target:
        tr = rows
    else:
        tr = min(rows, max(_SUBLANE, (rows_target // _SUBLANE) * _SUBLANE))

    # Prefer >= 2 grid steps when there is enough data: the "parallel" grid
    # axis is sharded across both TensorCores on v7x (no-op on v5e/v6e).
    if pl.cdiv(rows, tr) < 2 and rows >= 2 * _SUBLANE:
        tr = ((rows + 1) // 2 + _SUBLANE - 1) // _SUBLANE * _SUBLANE

    return rows, lane, tr


def _identity_copy_impl(x):
    n = x.size
    if n == 0:
        return x

    itemsize = jnp.dtype(x.dtype).itemsize
    rows, lane, tr = _choose_layout(x.shape, itemsize)
    grid_r = pl.cdiv(rows, tr)

    x2 = x.reshape(rows, lane)

    out2 = pl.pallas_call(
        _identity_kernel,
        out_shape=jax.ShapeDtypeStruct((rows, lane), x.dtype),
        grid_spec=pltpu.PrefetchScalarGridSpec(
            num_scalar_prefetch=0,
            grid=(grid_r,),
            in_specs=[pl.BlockSpec((tr, lane), lambda i: (i, 0))],
            out_specs=pl.BlockSpec((tr, lane), lambda i: (i, 0)),
        ),
        # Identity: write straight back into the input buffer — no fresh HBM
        # output allocation, halves the HBM footprint of the op.
        input_output_aliases={0: 0},
        cost_estimate=pl.CostEstimate(
            flops=0,
            transcendentals=0,
            bytes_accessed=2 * n * itemsize,
        ),
        compiler_params=pltpu.CompilerParams(
            dimension_semantics=("parallel",),
        ),
    )(x2)

    return out2.reshape(x.shape)


# Shapes are static under jit, so the layout/tile selection above is pure
# trace-time Python; reshapes inside the jit become bitcasts.
_identity_copy = jax.jit(_identity_copy_impl)


def print_size_forward(x):
    """Pallas implementation of PrintSize.forward: print shape, return x."""
    # Host-side shape print, matching `print(x.shape)` in the torch module.
    print(tuple(x.shape))
    return _identity_copy(x)


if __name__ == "__main__":
    key = jax.random.PRNGKey(0)
    # Small NCHW input consistent with an encoder feature map.
    x = jax.random.normal(key, (2, 4, 16, 16), dtype=jnp.float32)

    y = print_size_forward(x)
    y = jax.block_until_ready(y)

    assert y.shape == x.shape and y.dtype == x.dtype
    assert bool(jnp.all(y == x))
    print("KERNEL_OK")
</pallas_src>

<mosaic_0001>
module attributes {stable_mosaic.version = 11 : i64} {
  func.func @_identity_kernel(%arg0: i32, %arg1: memref<1x2048xf32, #tpu.memory_space<vmem>>, %arg2: memref<1x2048xf32, #tpu.memory_space<vmem>>) attributes {dimension_semantics = [#tpu.dimension_semantics<parallel>], iteration_bounds = array<i64: 1>, scalar_prefetch = 0 : i64, scratch_operands = 0 : i64, tpu.core_type = #tpu.core_type<tc>, window_params = [{transform_indices = @transform_0, window_bounds = array<i64: 1, 2048>}, {transform_indices = @transform_1, window_bounds = array<i64: 1, 2048>}]} {
    %c0 = arith.constant 0 : index
    %c0_0 = arith.constant 0 : index
    %0 = vector.load %arg1[%c0, %c0_0] : memref<1x2048xf32, #tpu.memory_space<vmem>>, vector<1x2048xf32>
    %c0_1 = arith.constant 0 : index
    %c0_2 = arith.constant 0 : index
    %1 = vector.load %arg2[%c0_1, %c0_2] : memref<1x2048xf32, #tpu.memory_space<vmem>>, vector<1x2048xf32>
    tpu.vector_store %arg2[%c0_1, %c0_2], %0 {strides = array<i32>} : memref<1x2048xf32, #tpu.memory_space<vmem>>, vector<1x2048xf32>,
    return
  }
  func.func @transform_0(%arg0: i32) -> (i32, i32) {
    %c0_i32 = arith.constant 0 : i32
    %c0_i32_0 = arith.constant 0 : i32
    return %arg0, %c0_i32 : i32, i32
  }
  func.func @transform_1(%arg0: i32) -> (i32, i32) {
    %c0_i32 = arith.constant 0 : i32
    %c0_i32_0 = arith.constant 0 : i32
    return %arg0, %c0_i32 : i32, i32
  }
}

</mosaic_0001>

<bundles_post_ra>
// kernel: _identity_copy_impl.1
= control target key start
LH: loop header
LB: loop body
LE: loop exit
PB: predicated region body
PF: predicated region fallthrough
CT: control target
= control target key end

     0   :  { %s38_s0 = inlined_call_operand.vmem [shape: f32[1,2048], index: 0, kind: input, shape index: {}, may-alias: {0,1}]   ;;  %s39_s1 = inlined_call_operand.vmem [shape: f32[1,2048], index: 1, kind: output, shape index: {}, may-alias: {0,1}]  }
   0x1   :  { %v8_v0 = vld [vmem:[%s38_s0] sm:$0xff]  ;;  %v9_v1 = vld [vmem:[%s38_s0 + $0x8] sm:$0xff] }
   0x2   :  { %10 = vst [vmem:[%s39_s1] sm:$0xff] %v8_v0  ;;  %11 = vst [vmem:[%s39_s1 + $0x8] sm:$0xff] %v9_v1 }

</bundles_post_ra>
